<compile_context>
chip_gen: v5e
topology: v5e:2x2
jax: 0.10.0
libtpu: 0.0.40
codegen_flags: <defaults>
</compile_context>

<pallas_src>
import jax
import jax.numpy as jnp
import numpy as np
from jax import lax
from jax.experimental import pallas as pl
from jax.experimental.pallas import tpu as pltpu


def _round_up(x, m):
    return ((x + m - 1) // m) * m


def _largest_dividing_tile(m_pad, desired):
    """Largest multiple of 128 that divides m_pad and is <= desired."""
    best = 128
    for t in range(128, min(desired, m_pad) + 1, 128):
        if m_pad % t == 0:
            best = t
    return best


def _sigmoid(x):
    # EUP-friendly sigmoid: exp -> EUP, divide -> EUP vrcp (approx), so the
    # elementwise epilogue stays off the VALU slots and hides under DMA.
    return pl.reciprocal(1.0 + jnp.exp(-x), approx=True)


# ---------------------------------------------------------------------------
# Kernel 1: forward(users, items) -> sigmoid(sum(users_emb * items_emb, dim=1))
# Operands arrive transposed as (D, tile_b) blocks so the reduction over D
# (sublane axis) lands in a lane-dense (1, tile_b) output store.
# ---------------------------------------------------------------------------
def _puremf_forward_kernel(u_ref, i_ref, o_ref):
    s = jnp.sum(u_ref[...] * i_ref[...], axis=0, keepdims=True)   # (1, TB) f32
    o_ref[...] = _sigmoid(s).astype(o_ref.dtype)


# ---------------------------------------------------------------------------
# Kernel 2: getUsersRating(users) -> sigmoid(users_emb @ item_table.T)
# Resident (B_pad, D) user block; lane-dense (D, tile_n) item tiles streamed
# over a 1-D grid (auto double-buffered); f32 MXU accumulation.
# ---------------------------------------------------------------------------
def _puremf_rating_kernel(u_ref, w_ref, o_ref):
    scores = lax.dot_general(
        u_ref[...], w_ref[...],                       # (B_pad, D) x (D, TN)
        dimension_numbers=(((1,), (0,)), ((), ())),   # canonical (M,K)x(K,N)
        preferred_element_type=jnp.float32,
    )                                                 # (B_pad, TN) f32
    o_ref[...] = _sigmoid(scores).astype(o_ref.dtype)


class PureMFPallas:
    """JAX/Pallas port of PureMF.forward / PureMF.getUsersRating."""

    def __init__(
        self,
        user_table,
        item_table,
        *,
        item_dtype=jnp.bfloat16,                # streamed item-table storage dtype
        vmem_budget_bytes=24 * 1024 * 1024,     # per-core working-set budget
        vmem_limit_bytes=32 * 1024 * 1024,      # scoped VMEM limit passed to Mosaic
    ):
        self.user_table = jnp.asarray(user_table, jnp.float32)    # (N, D)
        self.item_table = jnp.asarray(item_table, jnp.float32)    # (M, D), for forward()
        self.M, self.D = self.item_table.shape
        self.item_dtype = jnp.dtype(item_dtype)
        self.vmem_budget_bytes = int(vmem_budget_bytes)
        self.vmem_limit_bytes = int(vmem_limit_bytes)

        # One-time item-table preparation for getUsersRating: lane-dense
        # (D, M_pad) layout, cast once, padded so 128-multiple (and, for large
        # tables, 1024-multiple) tiles divide M_pad.  Cached; the kernel's own
        # DMA is the only per-call table traffic.
        M_pad = _round_up(self.M, 128)
        if M_pad >= 1024:
            M_pad = _round_up(M_pad, 1024)
        self.M_pad = M_pad
        items_t = self.item_table.T.astype(self.item_dtype)       # (D, M)
        if M_pad != self.M:
            items_t = jnp.pad(items_t, ((0, 0), (0, M_pad - self.M)))
        self.item_table_t = items_t                                # (D, M_pad)

    # -- forward(users, items) ------------------------------------------------
    def forward(self, users, items, *, tile_b=None):
        users = jnp.asarray(users)
        items = jnp.asarray(items)
        B = users.shape[0]
        D = self.D

        if tile_b is None:
            # Two double-buffered (D, tile_b) f32 operands.
            d_sub = _round_up(D, 8)
            per_col = 2 * 2 * d_sub * 4
            tile_b = (self.vmem_budget_bytes // per_col) // 128 * 128
            tile_b = max(128, min(4096, tile_b))
            tile_b = min(tile_b, max(128, _round_up(B, 128)))      # don't over-pad tiny B
        assert tile_b % 128 == 0
        B_pad = _round_up(max(B, tile_b), tile_b)

        users_p = jnp.pad(users, (0, B_pad - B))
        items_p = jnp.pad(items, (0, B_pad - B))
        # Glue gathers (jnp.take clamps OOB ids, unlike torch.nn.Embedding).
        u_t = jnp.take(self.user_table, users_p, axis=0).T         # (D, B_pad) f32
        i_t = jnp.take(self.item_table, items_p, axis=0).T         # (D, B_pad) f32

        out = pl.pallas_call(
            _puremf_forward_kernel,
            out_shape=jax.ShapeDtypeStruct((1, B_pad), jnp.float32),
            grid=(B_pad // tile_b,),
            in_specs=[
                pl.BlockSpec((D, tile_b), lambda j: (0, j)),
                pl.BlockSpec((D, tile_b), lambda j: (0, j)),
            ],
            out_specs=pl.BlockSpec((1, tile_b), lambda j: (0, j)),
            compiler_params=pltpu.CompilerParams(
                dimension_semantics=("parallel",),
                vmem_limit_bytes=self.vmem_limit_bytes,
            ),
        )(u_t, i_t)
        return out[0, :B]                                          # (B,)

    # -- getUsersRating(users) ------------------------------------------------
    def getUsersRating(self, users, *, tile_n=None, out_dtype=jnp.float32):
        out_dtype = jnp.dtype(out_dtype)
        users = jnp.asarray(users)
        B = users.shape[0]
        D, M, M_pad = self.D, self.M, self.M_pad

        # Glue gather; cast the small user block to the item storage dtype so
        # the MXU sees same-dtype operands (accumulation stays f32).
        users_emb = jnp.take(self.user_table, users, axis=0).astype(self.item_dtype)
        B_pad = _round_up(max(B, 8), 8)
        if B_pad != B:
            users_emb = jnp.pad(users_emb, ((0, B_pad - B), (0, 0)))

        if tile_n is None:
            # Real lane-dense VMEM footprint: double-buffered (D, tile_n) item
            # tile + double-buffered (B_pad, tile_n) output tile, plus the
            # resident user block.  Target 1024-4096 items per grid step.
            d_sub = _round_up(D, 8)
            per_col = 2 * (d_sub * self.item_dtype.itemsize + B_pad * out_dtype.itemsize)
            resident = B_pad * d_sub * self.item_dtype.itemsize
            desired = (self.vmem_budget_bytes - resident) // per_col
            desired = max(128, min(4096, (desired // 128) * 128))
            tile_n = _largest_dividing_tile(M_pad, desired)
        assert tile_n % 128 == 0 and M_pad % tile_n == 0, (tile_n, M_pad)

        out = pl.pallas_call(
            _puremf_rating_kernel,
            out_shape=jax.ShapeDtypeStruct((B_pad, M_pad), out_dtype),
            grid=(M_pad // tile_n,),
            in_specs=[
                pl.BlockSpec((B_pad, D), lambda j: (0, 0)),     # resident user block
                pl.BlockSpec((D, tile_n), lambda j: (0, j)),    # lane-dense item stream
            ],
            out_specs=pl.BlockSpec((B_pad, tile_n), lambda j: (0, j)),  # lane-dense stores
            compiler_params=pltpu.CompilerParams(
                dimension_semantics=("parallel",),              # megacore split on v7x
                vmem_limit_bytes=self.vmem_limit_bytes,
            ),
        )(users_emb, self.item_table_t)
        return out[:B, :M]


# ---------------------------------------------------------------------------
# Main: deterministic params + inputs, run, verify vs. plain-JAX reference.
# ---------------------------------------------------------------------------
if __name__ == "__main__":
    # Module config (small, consistent with PureMF.__init__):
    num_users, num_items, latent_dim = 64, 300, 32   # M=300 exercises M padding (-> 384)
    batch = 8

    key = jax.random.PRNGKey(0)
    k_u, k_i, k_uid, k_iid = jax.random.split(key, 4)

    # "using Normal distribution N(0,1) initialization for PureMF"
    user_table = jax.random.normal(k_u, (num_users, latent_dim), dtype=jnp.float32)
    item_table = jax.random.normal(k_i, (num_items, latent_dim), dtype=jnp.float32)

    users = jax.random.randint(k_uid, (batch,), 0, num_users, dtype=jnp.int32)
    items = jax.random.randint(k_iid, (batch,), 0, num_items, dtype=jnp.int32)

    ref_fwd = jax.nn.sigmoid(jnp.sum(user_table[users] * item_table[items], axis=1))
    ref_rating = jax.nn.sigmoid(user_table[users] @ item_table.T)

    # --- f32 item storage: structural check (approx-reciprocal sigmoid -> ~1e-4 err) ---
    model_f32 = PureMFPallas(user_table, item_table, item_dtype=jnp.float32)

    out = jax.block_until_ready(model_f32.forward(users, items))
    assert out.shape == (batch,)
    np.testing.assert_allclose(np.asarray(out), np.asarray(ref_fwd), rtol=5e-3, atol=5e-3)

    # Forced tile_n=128 exercises the item grid (M_pad=384 -> 3 steps).
    ratings = jax.block_until_ready(model_f32.getUsersRating(users, tile_n=128))
    assert ratings.shape == (batch, num_items)
    np.testing.assert_allclose(np.asarray(ratings), np.asarray(ref_rating),
                               rtol=5e-3, atol=5e-3)

    # Auto tile (picks the full 384-wide tile here).
    ratings_auto = jax.block_until_ready(model_f32.getUsersRating(users))
    np.testing.assert_allclose(np.asarray(ratings_auto), np.asarray(ref_rating),
                               rtol=5e-3, atol=5e-3)

    # --- default bf16 item streaming (HBM-bound sweep halved), f32 output ---
    model_bf16 = PureMFPallas(user_table, item_table)   # item_dtype=bfloat16 default
    ratings_bf16 = jax.block_until_ready(model_bf16.getUsersRating(users))
    np.testing.assert_allclose(np.asarray(ratings_bf16), np.asarray(ref_rating),
                               rtol=2e-2, atol=2e-2)

    # --- bf16 output stream (halves the (B, M) write) ---
    ratings_bf16o = jax.block_until_ready(
        model_bf16.getUsersRating(users, out_dtype=jnp.bfloat16))
    assert ratings_bf16o.dtype == jnp.bfloat16
    np.testing.assert_allclose(np.asarray(ratings_bf16o.astype(jnp.float32)),
                               np.asarray(ref_rating), rtol=2e-2, atol=2e-2)

    print("KERNEL_OK")
</pallas_src>

<mosaic_0001>
module attributes {stable_mosaic.version = 11 : i64} {
  func.func @_puremf_forward_kernel(%arg0: i32, %arg1: memref<32x128xf32, #tpu.memory_space<vmem>>, %arg2: memref<32x128xf32, #tpu.memory_space<vmem>>, %arg3: memref<1x128xf32, #tpu.memory_space<vmem>>) attributes {dimension_semantics = [#tpu.dimension_semantics<parallel>], iteration_bounds = array<i64: 1>, scalar_prefetch = 0 : i64, scratch_operands = 0 : i64, tpu.core_type = #tpu.core_type<tc>, window_params = [{transform_indices = @transform_0, window_bounds = array<i64: 32, 128>}, {transform_indices = @transform_1, window_bounds = array<i64: 32, 128>}, {transform_indices = @transform_2, window_bounds = array<i64: 1, 128>}]} {
    %c0 = arith.constant 0 : index
    %c0_0 = arith.constant 0 : index
    %0 = vector.load %arg1[%c0, %c0_0] : memref<32x128xf32, #tpu.memory_space<vmem>>, vector<32x128xf32>
    %c0_1 = arith.constant 0 : index
    %c0_2 = arith.constant 0 : index
    %1 = vector.load %arg2[%c0_1, %c0_2] : memref<32x128xf32, #tpu.memory_space<vmem>>, vector<32x128xf32>
    %2 = arith.mulf %0, %1 : vector<32x128xf32>
    %cst = arith.constant dense<0.000000e+00> : vector<128xf32>
    %3 = vector.multi_reduction <add>, %2, %cst [0] : vector<32x128xf32> to vector<128xf32>
    %4 = vector.shape_cast %3 : vector<128xf32> to vector<1x128xf32>
    %cst_3 = arith.constant 0.000000e+00 : f32
    %5 = vector.broadcast %cst_3 : f32 to vector<1x128xf32>
    %6 = arith.subf %5, %4 : vector<1x128xf32>
    %7 = math.exp %6 : vector<1x128xf32>
    %cst_4 = arith.constant 1.000000e+00 : f32
    %8 = vector.broadcast %cst_4 : f32 to vector<1x128xf32>
    %9 = arith.addf %8, %7 : vector<1x128xf32>
    %10 = tpu.reciprocal %9 {approx = true} : vector<1x128xf32> -> vector<1x128xf32>
    %c0_5 = arith.constant 0 : index
    %c0_6 = arith.constant 0 : index
    %11 = vector.load %arg3[%c0_5, %c0_6] : memref<1x128xf32, #tpu.memory_space<vmem>>, vector<1x128xf32>
    tpu.vector_store %arg3[%c0_5, %c0_6], %10 {strides = array<i32>} : memref<1x128xf32, #tpu.memory_space<vmem>>, vector<1x128xf32>,
    return
  }
  func.func @transform_0(%arg0: i32) -> (i32, i32) {
    %c0_i32 = arith.constant 0 : i32
    %c0_i32_0 = arith.constant 0 : i32
    return %c0_i32, %arg0 : i32, i32
  }
  func.func @transform_1(%arg0: i32) -> (i32, i32) {
    %c0_i32 = arith.constant 0 : i32
    %c0_i32_0 = arith.constant 0 : i32
    return %c0_i32, %arg0 : i32, i32
  }
  func.func @transform_2(%arg0: i32) -> (i32, i32) {
    %c0_i32 = arith.constant 0 : i32
    %c0_i32_0 = arith.constant 0 : i32
    return %c0_i32, %arg0 : i32, i32
  }
}

</mosaic_0001>

<bundles_post_ra>
// kernel: tpu_custom_call.1
= control target key start
LH: loop header
LB: loop body
LE: loop exit
PB: predicated region body
PF: predicated region fallthrough
CT: control target
= control target key end

     0   :  { %7 = vsyncpa [#allocation3], 0  ;;  %s205_s0 = inlined_call_operand.hbm [shape: f32[32,128], index: 0, kind: input, shape index: {}]   ;;  %s206_s1 = inlined_call_operand.hbm [shape: f32[32,128], index: 1, kind: input, shape index: {}]   ;;  %s207_s2 = inlined_call_operand.hbm [shape: f32[1,128], index: 2, kind: output, shape index: {}]  }
   0x1   :  { %8 = vsyncpa [#allocation6], 0 }
   0x2   :  { %9 = vsyncpa [#allocation4], 0  ;;  %s14_s11 = sshll.u32 %s205_s0, 4  ;;  %s176_s12 = smov [#allocation2]   ;;  %s15_s11 = int_to_ptr.hbm [resolvable:$true] %s14_s11 }
   0x3   :  { %s16_s13 = sshll.u32 %s176_s12, 4  ;;  %s27_s16 = sshll.u32 %s206_s1, 4  ;;  %s17_s13 = int_to_ptr.vmem [resolvable:$true] %s16_s13  ;;  %s28_s16 = int_to_ptr.hbm [resolvable:$true] %s27_s16 }
   0x4   :  { %s177_s17 = smov 128   ;;  %s178_s18 = smov 8  }
   0x5   :  { %22 = dma.hbm_to_vmem [thread:$0]  %s15_s11, 512, %s17_s13, [#allocation3], %s177_s17, %s177_s17, %s178_s18  }
   0x6   :  { %s179_s19 = smov [#allocation5]  }
   0x7   :  { %s29_s20 = sshll.u32 %s179_s19, 4  ;;  %s30_s20 = int_to_ptr.vmem [resolvable:$true] %s29_s20 }
   0x8   :  { %35 = dma.hbm_to_vmem [thread:$0]  %s28_s16, 512, %s30_s20, [#allocation6], %s177_s17, %s177_s17, %s178_s18  }
   0x9   :  { %170 = dma.done.wait [#allocation3], 512  }
   0xa   :  { %171 = vsyncadd [#allocation3], 4294966784 }
   0xb   :  { %172 = dma.done.wait [#allocation6], 512  }
   0xc   :  { %173 = vsyncadd [#allocation6], 4294966784  ;;  %v44_v0 = vld [vmem:[#allocation2] sm:$0xff]  ;;  %v45_v1 = vld [vmem:[#allocation2 + $0x8] sm:$0xff]  ;;  %s180_s0 = smov [#allocation7]   ;;  %s78_s23 = sshll.u32 %s207_s2, 4  ;;  %s79_s23 = int_to_ptr.hbm [resolvable:$true] %s78_s23 }
   0xd   :  { %v46_v2 = vld [vmem:[#allocation2 + $0x10] sm:$0xff]  ;;  %v47_v3 = vld [vmem:[#allocation2 + $0x18] sm:$0xff]  ;;  %v48_v4 = vld [vmem:[#allocation5] sm:$0xff]  ;;  %s76_s1 = sshll.u32 %s180_s0, 4  ;;  %s77_s1 = int_to_ptr.vmem [resolvable:$true] %s76_s1 }
   0xe   :  { %v49_v5 = vld [vmem:[#allocation5 + $0x8] sm:$0xff]  ;;  %v50_v6 = vld [vmem:[#allocation5 + $0x10] sm:$0xff]  ;;  %v51_v7 = vld [vmem:[#allocation5 + $0x18] sm:$0xff]  ;;  %v52_v8 = vmul.f32 %v48_v4, %v44_v0 }
   0xf   :  { %v53_v9 = vmul.f32 %v49_v5, %v45_v1  ;;  %v54_v10 = vmul.f32 %v50_v6, %v46_v2  ;;  %v55_v11 = vmul.f32 %v51_v7, %v47_v3 }
  0x11   :  { %v56_v12 = vadd.f32 %v53_v9, %v52_v8 }
  0x13   :  { %v57_v13 = vadd.f32 %v56_v12, %v54_v10 }
  0x15   :  { %v58_v14 = vadd.f32 %v57_v13, %v55_v11 }
  0x17   :  { %v59_v15 = vrot.slane %v58_v14, 4 }
  0x19   :  { %v60_v16 = vadd.f32 %v59_v15, %v58_v14 }
  0x1b   :  { %v61_v17 = vrot.slane %v60_v16, 2 }
  0x1d   :  { %v62_v18 = vadd.f32 %v61_v17, %v60_v16 }
  0x1f   :  { %v63_v19 = vrot.slane %v62_v18, 1 }
  0x21   :  { %v64_v20 = vadd.f32 %v63_v19, %v62_v18 }
  0x23   :  { %v65_v21 = vsub.f32 0.0, %v64_v20 }
  0x25   :  { %v66_v22 = vmul.f32 1.442695, %v65_v21 }
  0x27   :  { %94 = vpow2.f32 %v66_v22 }
  0x2d   :  { %v95_v23 = vpop.eup %94 }
  0x2e   :  { %v68_v24 = vadd.f32 1.0, %v95_v23 }
  0x30   :  { %96 = vrcp.f32 %v68_v24 }
  0x36   :  { %v97_v25 = vpop.eup %96 }
  0x37   :  { %70 = vst [vmem:[#allocation7] sm:$0x1] %v97_v25 }
  0x38   :  { %81 = dma.vmem_to_hbm [thread:$0]  %s77_s1, 16, %s79_s23, [#allocation4]  }
  0x39   :  { %174 = dma.done.wait [#allocation4], 16  }
  0x3a   :  { %175 = vsyncadd [#allocation4], 4294967280 }
  0x3b   :  { %86 = vsyncpa [#allocation3], 1 }
  0x3c   :  { %87 = vsyncpa [#allocation6], 1 }
  0x3d   :  { %88 = vsyncpa [#allocation4], 1 }

</bundles_post_ra>
